<compile_context>
chip_gen: v5e
topology: v5e:2x2
jax: 0.10.0
libtpu: 0.0.40
codegen_flags: <defaults>
</compile_context>

<pallas_src>
import functools

import jax
import jax.numpy as jnp
from jax.experimental import pallas as pl
from jax.experimental.pallas import tpu as pltpu


def _mlp_kernel(x_ref, w1_ref, w2_ref, bias_ref, o_ref):
    # x_ref:   (TB, Fin)  f32 (or bf16)  -- batch tile, cast to bf16 in-kernel
    # w1_ref:  (Fin, Lp)  bf16           -- zero-padded columns L..Lp
    # w2_ref:  (Lp, Lp)   bf16           -- zero-padded rows/cols L..Lp
    # bias_ref:(2, Lp)    f32            -- row 0 = b1, row 1 = b2 (zero-padded)
    # o_ref:   (TB, Lp)   bf16
    b1 = bias_ref[0:1, :]
    b2 = bias_ref[1:2, :]

    # First Linear on the MXU: cast x tile to bf16 here (VPU work, hidden
    # under the x DMA), accumulate in f32.
    x_bf16 = x_ref[...].astype(jnp.bfloat16)
    h = jnp.dot(x_bf16, w1_ref[...], preferred_element_type=jnp.float32)
    # Dropout(p=0.3): identity in eval mode.  Bias + ReLU in f32 on the VPU.
    h = jnp.maximum(h + b1, 0.0)

    # Second Linear on the MXU.
    out = jnp.dot(h.astype(jnp.bfloat16), w2_ref[...],
                  preferred_element_type=jnp.float32)
    o_ref[...] = (out + b2).astype(o_ref.dtype)


def _round_up(n, m):
    return ((n + m - 1) // m) * m


@functools.partial(jax.jit, static_argnames=("tb_cap",))
def vanilla_approximator(x, w1, b1, w2, b2, *, tb_cap=1024):
    """Forward pass of VanillaApproximator (eval mode).

    x:  [B, arch_in_features + data_in_features]  float32 (or bfloat16)
    w1: [Fin, dim_logits], b1: [dim_logits]
    w2: [dim_logits, dim_logits], b2: [dim_logits]
    returns logits [B, dim_logits] float32
    """
    B, Fin = x.shape
    L = w1.shape[1]
    Lp = _round_up(L, 128)                      # lane-dense output width

    # Batch tile: multiple of 16 (bf16 output sublane packing), capped so the
    # last ragged block is handled by Pallas boundary logic (no x padding).
    TB = min(_round_up(max(tb_cap, 16), 16), _round_up(B, 16))
    num_tiles = pl.cdiv(B, TB)

    # Pad + cast the (tiny) weight operands; biases stay f32, packed in one block.
    w1_p = jnp.zeros((Fin, Lp), jnp.bfloat16).at[:, :L].set(
        w1.astype(jnp.bfloat16))
    w2_p = jnp.zeros((Lp, Lp), jnp.bfloat16).at[:L, :L].set(
        w2.astype(jnp.bfloat16))
    bias = (jnp.zeros((2, Lp), jnp.float32)
            .at[0, :L].set(b1.astype(jnp.float32))
            .at[1, :L].set(b2.astype(jnp.float32)))

    # VMEM budget for the requested tile: double-buffered x, in-kernel bf16
    # cast temp, out/h buffers, weights, plus headroom.  Clamped so it stays
    # below the physical VMEM of every generation (v7x = 64 MiB).
    xbytes = jnp.dtype(x.dtype).itemsize
    est_vmem = (2 * TB * Fin * xbytes          # double-buffered x tiles
                + TB * Fin * 2                 # bf16 cast of the x tile
                + 4 * TB * Lp * 4              # h temp + double-buffered out
                + 2 * (Fin + Lp + 2) * Lp * 4  # weights + bias (double-buffered)
                + (4 << 20))                   # misc headroom
    vmem_limit = int(min(max(est_vmem, 32 << 20), 56 << 20))

    cost = pl.CostEstimate(
        flops=2 * B * Fin * Lp + 2 * B * Lp * Lp,
        transcendentals=0,
        bytes_accessed=(B * Fin * xbytes            # x read
                        + B * Lp * 2                # bf16 out write
                        + (Fin * Lp + Lp * Lp) * 2  # weights
                        + 2 * Lp * 4),              # biases
    )

    out = pl.pallas_call(
        _mlp_kernel,
        out_shape=jax.ShapeDtypeStruct((B, Lp), jnp.bfloat16),
        grid=(num_tiles,),
        in_specs=[
            pl.BlockSpec((TB, Fin), lambda i: (i, 0)),   # x: tiled over batch
            pl.BlockSpec((Fin, Lp), lambda i: (0, 0)),   # W1: VMEM-resident
            pl.BlockSpec((Lp, Lp), lambda i: (0, 0)),    # W2: VMEM-resident
            pl.BlockSpec((2, Lp), lambda i: (0, 0)),     # packed biases
        ],
        out_specs=pl.BlockSpec((TB, Lp), lambda i: (i, 0)),
        compiler_params=pltpu.CompilerParams(
            dimension_semantics=("parallel",),           # dual-TC on v7x
            vmem_limit_bytes=vmem_limit,
        ),
        cost_estimate=cost,
    )(x, w1_p, w2_p, bias)

    # Slice the 10 real logit lanes back out; cast to f32 to match PyTorch.
    return out[:, :L].astype(jnp.float32)


def _init_params(key, arch_in_features, data_in_features, dim_logits):
    """Deterministic PyTorch-style (uniform +/- 1/sqrt(fan_in)) init."""
    fin = arch_in_features + data_in_features
    k1, k2, k3, k4 = jax.random.split(key, 4)
    bound1 = 1.0 / jnp.sqrt(fin)
    bound2 = 1.0 / jnp.sqrt(dim_logits)
    w1 = jax.random.uniform(k1, (fin, dim_logits), jnp.float32, -bound1, bound1)
    b1 = jax.random.uniform(k2, (dim_logits,), jnp.float32, -bound1, bound1)
    w2 = jax.random.uniform(k3, (dim_logits, dim_logits), jnp.float32,
                            -bound2, bound2)
    b2 = jax.random.uniform(k4, (dim_logits,), jnp.float32, -bound2, bound2)
    return w1, b1, w2, b2


if __name__ == "__main__":
    # Small, module-consistent shapes.
    arch_in_features = 16
    data_in_features = 2048
    dim_logits = 10

    key = jax.random.PRNGKey(0)
    k_x, k_p = jax.random.split(key)
    w1, b1, w2, b2 = _init_params(
        k_p, arch_in_features, data_in_features, dim_logits
    )

    def ref_fwd(x):
        # Pure-JAX f32 reference (dropout = identity in eval mode).
        return jnp.maximum(x @ w1 + b1, 0.0) @ w2 + b2

    # Case 1: single-tile path (batch=8, smaller than one tile).
    batch = 8
    x = jax.random.normal(
        k_x, (batch, arch_in_features + data_in_features), jnp.float32
    )
    logits = vanilla_approximator(x, w1, b1, w2, b2)
    jax.block_until_ready(logits)
    assert logits.shape == (batch, dim_logits)
    assert logits.dtype == jnp.float32
    # bf16 MXU operands + bf16 output store -> relaxed tolerance vs f32 ref.
    assert jnp.allclose(logits, ref_fwd(x), atol=5e-2, rtol=5e-2)

    # Case 2: multi-tile path with a ragged last tile (batch=20, TB=16).
    batch2 = 20
    x2 = jax.random.normal(
        jax.random.PRNGKey(1),
        (batch2, arch_in_features + data_in_features), jnp.float32
    )
    logits2 = vanilla_approximator(x2, w1, b1, w2, b2, tb_cap=16)
    jax.block_until_ready(logits2)
    assert logits2.shape == (batch2, dim_logits)
    assert jnp.allclose(logits2, ref_fwd(x2), atol=5e-2, rtol=5e-2)

    print("KERNEL_OK")
</pallas_src>

<mosaic_0001>
module attributes {stable_mosaic.version = 11 : i64} {
  func.func @_mlp_kernel(%arg0: i32, %arg1: memref<16x2064xf32, #tpu.memory_space<vmem>>, %arg2: memref<2064x128xbf16, #tpu.memory_space<vmem>>, %arg3: memref<128x128xbf16, #tpu.memory_space<vmem>>, %arg4: memref<2x128xf32, #tpu.memory_space<vmem>>, %arg5: memref<16x128xbf16, #tpu.memory_space<vmem>>) attributes {dimension_semantics = [#tpu.dimension_semantics<parallel>], iteration_bounds = array<i64: 1>, scalar_prefetch = 0 : i64, scratch_operands = 0 : i64, tpu.core_type = #tpu.core_type<tc>, window_params = [{transform_indices = @transform_0, window_bounds = array<i64: 16, 2064>}, {pipeline_mode = #tpu.pipeline_mode<synchronous>, transform_indices = @transform_1, window_bounds = array<i64: 2064, 128>}, {pipeline_mode = #tpu.pipeline_mode<synchronous>, transform_indices = @transform_2, window_bounds = array<i64: 128, 128>}, {pipeline_mode = #tpu.pipeline_mode<synchronous>, transform_indices = @transform_3, window_bounds = array<i64: 2, 128>}, {transform_indices = @transform_4, window_bounds = array<i64: 16, 128>}]} {
    %c0 = arith.constant 0 : index
    %c0_0 = arith.constant 0 : index
    %0 = vector.load %arg4[%c0, %c0_0] : memref<2x128xf32, #tpu.memory_space<vmem>>, vector<1x128xf32>
    %c1 = arith.constant 1 : index
    %c0_1 = arith.constant 0 : index
    %1 = vector.load %arg4[%c1, %c0_1] : memref<2x128xf32, #tpu.memory_space<vmem>>, vector<1x128xf32>
    %c0_2 = arith.constant 0 : index
    %c0_3 = arith.constant 0 : index
    %2 = vector.load %arg1[%c0_2, %c0_3] : memref<16x2064xf32, #tpu.memory_space<vmem>>, vector<16x2064xf32>
    %3 = arith.truncf %2 : vector<16x2064xf32> to vector<16x2064xbf16>
    %c0_4 = arith.constant 0 : index
    %c0_5 = arith.constant 0 : index
    %4 = vector.load %arg2[%c0_4, %c0_5] : memref<2064x128xbf16, #tpu.memory_space<vmem>>, vector<2064x128xbf16>
    %cst = arith.constant dense<0.000000e+00> : vector<16x128xf32>
    %5 = tpu.matmul %3, %4, %cst {dimension_numbers = #tpu.dot_dimension_numbers<[1], [0], [0], [1], [0, 0, 1, 1], [], []>} : vector<16x2064xbf16>, vector<2064x128xbf16>, vector<16x128xf32> -> vector<16x128xf32>
    %6 = vector.broadcast %0 : vector<1x128xf32> to vector<16x128xf32>
    %7 = arith.addf %5, %6 : vector<16x128xf32>
    %cst_6 = arith.constant 0.000000e+00 : f32
    %8 = vector.broadcast %cst_6 : f32 to vector<16x128xf32>
    %9 = arith.maximumf %7, %8 : vector<16x128xf32>
    %10 = arith.truncf %9 : vector<16x128xf32> to vector<16x128xbf16>
    %c0_7 = arith.constant 0 : index
    %c0_8 = arith.constant 0 : index
    %11 = vector.load %arg3[%c0_7, %c0_8] : memref<128x128xbf16, #tpu.memory_space<vmem>>, vector<128x128xbf16>
    %cst_9 = arith.constant dense<0.000000e+00> : vector<16x128xf32>
    %12 = tpu.matmul %10, %11, %cst_9 {dimension_numbers = #tpu.dot_dimension_numbers<[1], [0], [0], [1], [0, 0, 1, 1], [], []>} : vector<16x128xbf16>, vector<128x128xbf16>, vector<16x128xf32> -> vector<16x128xf32>
    %13 = vector.broadcast %1 : vector<1x128xf32> to vector<16x128xf32>
    %14 = arith.addf %12, %13 : vector<16x128xf32>
    %15 = arith.truncf %14 : vector<16x128xf32> to vector<16x128xbf16>
    %c0_10 = arith.constant 0 : index
    %c0_11 = arith.constant 0 : index
    %16 = vector.load %arg5[%c0_10, %c0_11] : memref<16x128xbf16, #tpu.memory_space<vmem>>, vector<16x128xbf16>
    tpu.vector_store %arg5[%c0_10, %c0_11], %15 {strides = array<i32>} : memref<16x128xbf16, #tpu.memory_space<vmem>>, vector<16x128xbf16>,
    return
  }
  func.func @transform_0(%arg0: i32) -> (i32, i32) {
    %c0_i32 = arith.constant 0 : i32
    %c0_i32_0 = arith.constant 0 : i32
    return %arg0, %c0_i32 : i32, i32
  }
  func.func @transform_1(%arg0: i32) -> (i32, i32) {
    %c0_i32 = arith.constant 0 : i32
    %c0_i32_0 = arith.constant 0 : i32
    %c0_i32_1 = arith.constant 0 : i32
    return %c0_i32, %c0_i32_0 : i32, i32
  }
  func.func @transform_2(%arg0: i32) -> (i32, i32) {
    %c0_i32 = arith.constant 0 : i32
    %c0_i32_0 = arith.constant 0 : i32
    %c0_i32_1 = arith.constant 0 : i32
    return %c0_i32, %c0_i32_0 : i32, i32
  }
  func.func @transform_3(%arg0: i32) -> (i32, i32) {
    %c0_i32 = arith.constant 0 : i32
    %c0_i32_0 = arith.constant 0 : i32
    %c0_i32_1 = arith.constant 0 : i32
    return %c0_i32, %c0_i32_0 : i32, i32
  }
  func.func @transform_4(%arg0: i32) -> (i32, i32) {
    %c0_i32 = arith.constant 0 : i32
    %c0_i32_0 = arith.constant 0 : i32
    return %arg0, %c0_i32 : i32, i32
  }
}

</mosaic_0001>

<bundles_post_ra>
// kernel: vanilla_approximator.1
= control target key start
LH: loop header
LB: loop body
LE: loop exit
PB: predicated region body
PF: predicated region fallthrough
CT: control target
= control target key end

     0   :  { %vm1104_vm0 = vcmask 130048   ;;  %s2713_s0 = inlined_call_operand.vmem [shape: f32[8,2064], index: 0, kind: input, shape index: {}]   ;;  %s2714_s1 = inlined_call_operand.vmem [shape: bf16[2064,128], index: 1, kind: input, shape index: {}]   ;;  %s2715_s2 = inlined_call_operand.vmem [shape: bf16[128,128], index: 2, kind: input, shape index: {}]   ;;  %s2716_s3 = inlined_call_operand.vmem [shape: f32[2,128], index: 3, kind: input, shape index: {}]   ;;  %s2717_s4 = inlined_call_operand.vmem [shape: bf16[8,128], index: 4, kind: output, shape index: {}]  }
   0x1   :  { %v2029_v0 = vld [vmem:[%s2714_s1 + $0x38] sm:$0xff]  ;;  %v2028_v4 = vld [vmem:[%s2714_s1 + $0x30] sm:$0xff]  ;;  %v2027_v8 = vld [vmem:[%s2714_s1 + $0x28] sm:$0xff] }
   0x2   :  { %v2045_v1 = vld [vmem:[%s2714_s1 + $0xb8] sm:$0xff]  ;;  %1108 = vmatpush.bf16.msra.mxu0 %v2029_v0  ;;  %v2044_v5 = vld [vmem:[%s2714_s1 + $0xb0] sm:$0xff]  ;;  %v2043_v9 = vld [vmem:[%s2714_s1 + $0xa8] sm:$0xff] }
   0x3   :  { %v2053_v2 = vld [vmem:[%s2714_s1 + $0xf8] sm:$0xff]  ;;  %1136 = vmatpush.bf16.msra.mxu2 %v2045_v1  ;;  %v2052_v6 = vld [vmem:[%s2714_s1 + $0xf0] sm:$0xff]  ;;  %v2051_v10 = vld [vmem:[%s2714_s1 + $0xe8] sm:$0xff] }
   0x4   :  { %v2037_v3 = vld [vmem:[%s2714_s1 + $0x78] sm:$0xff]  ;;  %1150 = vmatpush.bf16.msra.mxu3 %v2053_v2  ;;  %v2036_v7 = vld [vmem:[%s2714_s1 + $0x70] sm:$0xff]  ;;  %v2035_v11 = vld [vmem:[%s2714_s1 + $0x68] sm:$0xff] }
   0x5   :  { %1122 = vmatpush.bf16.msra.mxu1 %v2037_v3  ;;  %v2026_v12 = vld [vmem:[%s2714_s1 + $0x20] sm:$0xff]  ;;  %v2025_v16 = vld [vmem:[%s2714_s1 + $0x18] sm:$0xff]  ;;  %v2024_v20 = vld [vmem:[%s2714_s1 + $0x10] sm:$0xff] }
   0x6   :  { %1109 = vmatpush.bf16.msra.mxu0 %v2028_v4  ;;  %v2042_v13 = vld [vmem:[%s2714_s1 + $0xa0] sm:$0xff]  ;;  %v2041_v17 = vld [vmem:[%s2714_s1 + $0x98] sm:$0xff]  ;;  %v2040_v21 = vld [vmem:[%s2714_s1 + $0x90] sm:$0xff] }
   0x7   :  { %1137 = vmatpush.bf16.msra.mxu2 %v2044_v5  ;;  %v2050_v14 = vld [vmem:[%s2714_s1 + $0xe0] sm:$0xff]  ;;  %v2049_v18 = vld [vmem:[%s2714_s1 + $0xd8] sm:$0xff]  ;;  %v2048_v22 = vld [vmem:[%s2714_s1 + $0xd0] sm:$0xff] }
   0x8   :  { %1151 = vmatpush.bf16.msra.mxu3 %v2052_v6  ;;  %v2034_v15 = vld [vmem:[%s2714_s1 + $0x60] sm:$0xff]  ;;  %v2033_v19 = vld [vmem:[%s2714_s1 + $0x58] sm:$0xff]  ;;  %v2032_v23 = vld [vmem:[%s2714_s1 + $0x50] sm:$0xff] }
   0x9   :  { %1123 = vmatpush.bf16.msra.mxu1 %v2036_v7  ;;  %v2023_v24 = vld [vmem:[%s2714_s1 + $0x8] sm:$0xff]  ;;  %v2022_v28 = vld [vmem:[%s2714_s1] sm:$0xff]  ;;  %v2061_v31 = vld [vmem:[%s2714_s1 + $0x138] sm:$0xff] }
   0xa   :  { %1110 = vmatpush.bf16.msra.mxu0 %v2027_v8  ;;  %v2039_v25 = vld [vmem:[%s2714_s1 + $0x88] sm:$0xff]  ;;  %v2038_v29 = vld [vmem:[%s2714_s1 + $0x80] sm:$0xff]  ;;  %v2077_v34 = vld [vmem:[%s2714_s1 + $0x1b8] sm:$0xff] }
   0xb   :  { %1138 = vmatpush.bf16.msra.mxu2 %v2043_v9  ;;  %v2047_v26 = vld [vmem:[%s2714_s1 + $0xc8] sm:$0xff]  ;;  %v2046_v30 = vld [vmem:[%s2714_s1 + $0xc0] sm:$0xff]  ;;  %v22_v35 = vld [vmem:[%s2713_s0 + $0x10] sm:$0xff] }
   0xc   :  { %1152 = vmatpush.bf16.msra.mxu3 %v2051_v10  ;;  %v2031_v27 = vld [vmem:[%s2714_s1 + $0x48] sm:$0xff]  ;;  %v20_v32 = vld [vmem:[%s2713_s0] sm:$0xff]  ;;  %v39_v36 = vld [vmem:[%s2713_s0 + $0x98] sm:$0xff] }
   0xd   :  { %1124 = vmatpush.bf16.msra.mxu1 %v2035_v11  ;;  %v37_v33 = vld [vmem:[%s2713_s0 + $0x88] sm:$0xff]  ;;  %v2085_v37 = vld [vmem:[%s2714_s1 + $0x1f8] sm:$0xff]  ;;  %v40_v39 = vld [vmem:[%s2713_s0 + $0xa0] sm:$0xff]  ;;  %v56_v43 = vpack.c.bf16 %v39_v36, %v22_v35 }
   0xe   :  { %1111 = vmatpush.bf16.msra.mxu0 %v2026_v12  ;;  %v23_v38 = vld [vmem:[%s2713_s0 + $0x18] sm:$0xff]  ;;  %v2030_v40 = vld [vmem:[%s2714_s1 + $0x40] sm:$0xff]  ;;  %v54_v41 = vpack.c.bf16 %v37_v33, %v20_v32  ;;  %v21_v44 = vld [vmem:[%s2713_s0 + $0x8] sm:$0xff] }
   0xf   :  { %1139 = vmatpush.bf16.msra.mxu2 %v2042_v13  ;;  %v2069_v42 = vld [vmem:[%s2714_s1 + $0x178] sm:$0xff]  ;;  %v38_v45 = vld [vmem:[%s2713_s0 + $0x90] sm:$0xff]  ;;  %v57_v47 = vpack.c.bf16 %v40_v39, %v23_v38  ;;  %v2059_v52 = vld [vmem:[%s2714_s1 + $0x128] sm:$0xff] }
  0x10   :  { %1153 = vmatpush.bf16.msra.mxu3 %v2050_v14  ;;  %v2060_v46 = vld [vmem:[%s2714_s1 + $0x130] sm:$0xff]  ;;  %v55_v50 = vpack.c.bf16 %v38_v45, %v21_v44  ;;  %v2075_v53 = vld [vmem:[%s2714_s1 + $0x1a8] sm:$0xff]  ;;  %v2058_v56 = vld [vmem:[%s2714_s1 + $0x120] sm:$0xff] }
  0x11   :  { %1125 = vmatpush.bf16.msra.mxu1 %v2034_v15  ;;  %v2076_v48 = vld [vmem:[%s2714_s1 + $0x1b0] sm:$0xff]  ;;  %v2083_v54 = vld [vmem:[%s2714_s1 + $0x1e8] sm:$0xff]  ;;  %v2074_v57 = vld [vmem:[%s2714_s1 + $0x1a0] sm:$0xff] }
  0x12   :  { %1112 = vmatpush.bf16.msra.mxu0 %v2025_v16  ;;  %v2084_v49 = vld [vmem:[%s2714_s1 + $0x1f0] sm:$0xff]  ;;  %v2067_v55 = vld [vmem:[%s2714_s1 + $0x168] sm:$0xff]  ;;  %v2082_v58 = vld [vmem:[%s2714_s1 + $0x1e0] sm:$0xff] }
  0x13   :  { %1140 = vmatpush.bf16.msra.mxu2 %v2041_v17  ;;  %v2068_v51 = vld [vmem:[%s2714_s1 + $0x170] sm:$0xff]  ;;  %v2066_v59 = vld [vmem:[%s2714_s1 + $0x160] sm:$0xff]  ;;  %v2057_v60 = vld [vmem:[%s2714_s1 + $0x118] sm:$0xff] }
  0x14   :  { %1154 = vmatpush.bf16.msra.mxu3 %v2049_v18  ;;  %v2073_v61 = vld [vmem:[%s2714_s1 + $0x198] sm:$0xff]  ;;  %v2056_v0 = vld [vmem:[%s2714_s1 + $0x110] sm:$0xff]  ;;  %v2055_v4 = vld [vmem:[%s2714_s1 + $0x108] sm:$0xff] }
  0x15   :  { %1126 = vmatpush.bf16.msra.mxu1 %v2033_v19  ;;  %v2081_v62 = vld [vmem:[%s2714_s1 + $0x1d8] sm:$0xff]  ;;  %v2072_v1 = vld [vmem:[%s2714_s1 + $0x190] sm:$0xff]  ;;  %v2071_v5 = vld [vmem:[%s2714_s1 + $0x188] sm:$0xff] }
  0x16   :  { %1113 = vmatpush.bf16.msra.mxu0 %v2024_v20  ;;  %v2065_v63 = vld [vmem:[%s2714_s1 + $0x158] sm:$0xff]  ;;  %v2080_v2 = vld [vmem:[%s2714_s1 + $0x1d0] sm:$0xff]  ;;  %v2079_v6 = vld [vmem:[%s2714_s1 + $0x1c8] sm:$0xff] }
  0x17   :  { %1141 = vmatpush.bf16.msra.mxu2 %v2040_v21  ;;  %v2064_v3 = vld [vmem:[%s2714_s1 + $0x150] sm:$0xff]  ;;  %v2063_v7 = vld [vmem:[%s2714_s1 + $0x148] sm:$0xff]  ;;  %v2054_v8 = vld [vmem:[%s2714_s1 + $0x100] sm:$0xff] }
  0x18   :  { %1155 = vmatpush.bf16.msra.mxu3 %v2048_v22  ;;  %v2070_v9 = vld [vmem:[%s2714_s1 + $0x180] sm:$0xff]  ;;  %v2093_v11 = vld [vmem:[%s2714_s1 + $0x238] sm:$0xff]  ;;  %v41_v14 = vld [vmem:[%s2713_s0 + $0xa8] sm:$0xff] }
  0x19   :  { %1127 = vmatpush.bf16.msra.mxu1 %v2032_v23  ;;  %v2078_v10 = vld [vmem:[%s2714_s1 + $0x1c0] sm:$0xff]  ;;  %v2109_v12 = vld [vmem:[%s2714_s1 + $0x2b8] sm:$0xff]  ;;  %v26_v15 = vld [vmem:[%s2713_s0 + $0x30] sm:$0xff] }
  0x1a   :  { %1114 = vmatpush.bf16.msra.mxu0 %v2023_v24  ;;  %v24_v13 = vld [vmem:[%s2713_s0 + $0x20] sm:$0xff]  ;;  %v43_v16 = vld [vmem:[%s2713_s0 + $0xb8] sm:$0xff]  ;;  %v25_v21 = vld [vmem:[%s2713_s0 + $0x28] sm:$0xff] }
  0x1b   :  { %1142 = vmatpush.bf16.msra.mxu2 %v2039_v25  ;;  %v2117_v17 = vld [vmem:[%s2714_s1 + $0x2f8] sm:$0xff]  ;;  %v44_v19 = vld [vmem:[%s2713_s0 + $0xc0] sm:$0xff]  ;;  %v42_v22 = vld [vmem:[%s2713_s0 + $0xb0] sm:$0xff]  ;;  %v58_v23 = vpack.c.bf16 %v41_v14, %v24_v13  ;;  %v60_v24 = vpack.c.bf16 %v43_v16, %v26_v15 }
  0x1c   :  { %1156 = vmatpush.bf16.msra.mxu3 %v2047_v26  ;;  %v27_v18 = vld [vmem:[%s2713_s0 + $0x38] sm:$0xff]  ;;  %v2062_v20 = vld [vmem:[%s2714_s1 + $0x140] sm:$0xff]  ;;  %v2091_v32 = vld [vmem:[%s2714_s1 + $0x228] sm:$0xff] }
  0x1d   :  { %1128 = vmatpush.bf16.msra.mxu1 %v2031_v27  ;;  %v2101_v25 = vld [vmem:[%s2714_s1 + $0x278] sm:$0xff]  ;;  %v61_v26 = vpack.c.bf16 %v44_v19, %v27_v18  ;;  %v59_v27 = vpack.c.bf16 %v42_v22, %v25_v21  ;;  %v2107_v33 = vld [vmem:[%s2714_s1 + $0x2a8] sm:$0xff]  ;;  %v2090_v36 = vld [vmem:[%s2714_s1 + $0x220] sm:$0xff] }
  0x1e   :  { %1115 = vmatpush.bf16.msra.mxu0 %v2022_v28  ;;  %v2092_v28 = vld [vmem:[%s2714_s1 + $0x230] sm:$0xff]  ;;  %v2099_v35 = vld [vmem:[%s2714_s1 + $0x268] sm:$0xff]  ;;  %v2114_v38 = vld [vmem:[%s2714_s1 + $0x2e0] sm:$0xff] }
  0x1f   :  { %1143 = vmatpush.bf16.msra.mxu2 %v2038_v29  ;;  %v2108_v29 = vld [vmem:[%s2714_s1 + $0x2b0] sm:$0xff]  ;;  %v2098_v39 = vld [vmem:[%s2714_s1 + $0x260] sm:$0xff]  ;;  %v2139_v13 = vld [vmem:[%s2714_s1 + $0x3a8] sm:$0xff] }
  0x20   :  { %1157 = vmatpush.bf16.msra.mxu3 %v2046_v30  ;;  %v2116_v30 = vld [vmem:[%s2714_s1 + $0x2f0] sm:$0xff]  ;;  %v2147_v14 = vld [vmem:[%s2714_s1 + $0x3e8] sm:$0xff]  ;;  %v2122_v16 = vld [vmem:[%s2714_s1 + $0x320] sm:$0xff] }
  0x21   :  { %1129 = vmatpush.bf16.msra.mxu1 %v2030_v40  ;;  %1116 = vmatmul.bf16.vlgmr.msra.gmra.mxu0 %v54_v41  ;;  %v2089_v40 = vld [vmem:[%s2714_s1 + $0x218] sm:$0xff]  ;;  %v2088_v44 = vld [vmem:[%s2714_s1 + $0x210] sm:$0xff]  ;;  %v2131_v15 = vld [vmem:[%s2714_s1 + $0x368] sm:$0xff] }
  0x22   :  { %1164 = vmatpush.bf16.msrb.mxu0 %v2061_v31  ;;  %1144 = vmatmul.bf16.vlgmr.msra.gmra.mxu2 %v56_v43  ;;  %v2100_v31 = vld [vmem:[%s2714_s1 + $0x270] sm:$0xff]  ;;  %v2105_v41 = vld [vmem:[%s2714_s1 + $0x298] sm:$0xff]  ;;  %v2146_v18 = vld [vmem:[%s2714_s1 + $0x3e0] sm:$0xff] }
  0x23   :  { %1192 = vmatpush.bf16.msrb.mxu2 %v2077_v34  ;;  %1158 = vmatmul.bf16.vlgmr.msra.gmra.mxu3 %v57_v47  ;;  %v2115_v34 = vld [vmem:[%s2714_s1 + $0x2e8] sm:$0xff]  ;;  %v2097_v43 = vld [vmem:[%s2714_s1 + $0x258] sm:$0xff]  ;;  %v2104_v45 = vld [vmem:[%s2714_s1 + $0x290] sm:$0xff] }
  0x24   :  { %1206 = vmatpush.bf16.msrb.mxu3 %v2085_v37  ;;  %1130 = vmatmul.bf16.vlgmr.msra.gmra.mxu1 %v55_v50  ;;  %v2106_v37 = vld [vmem:[%s2714_s1 + $0x2a0] sm:$0xff]  ;;  %v2096_v47 = vld [vmem:[%s2714_s1 + $0x250] sm:$0xff]  ;;  %v2111_v50 = vld [vmem:[%s2714_s1 + $0x2c8] sm:$0xff] }
  0x25   :  { %1178 = vmatpush.bf16.msrb.mxu1 %v2069_v42  ;;  %v2113_v42 = vld [vmem:[%s2714_s1 + $0x2d8] sm:$0xff]  ;;  %v2130_v19 = vld [vmem:[%s2714_s1 + $0x360] sm:$0xff] }
  0x26   :  { %1165 = vmatpush.bf16.msrb.mxu0 %v2060_v46  ;;  %v2112_v46 = vld [vmem:[%s2714_s1 + $0x2d0] sm:$0xff]  ;;  %v2137_v21 = vld [vmem:[%s2714_s1 + $0x398] sm:$0xff] }
  0x27   :  { %1193 = vmatpush.bf16.msrb.mxu2 %v2076_v48  ;;  %v2087_v48 = vld [vmem:[%s2714_s1 + $0x208] sm:$0xff]  ;;  %v2145_v22 = vld [vmem:[%s2714_s1 + $0x3d8] sm:$0xff] }
  0x28   :  { %1207 = vmatpush.bf16.msrb.mxu3 %v2084_v49  ;;  %v2103_v49 = vld [vmem:[%s2714_s1 + $0x288] sm:$0xff] }
  0x29   :  { %1179 = vmatpush.bf16.msrb.mxu1 %v2068_v51  ;;  %v2095_v51 = vld [vmem:[%s2714_s1 + $0x248] sm:$0xff] }
  0x2a   :  { %1166 = vmatpush.bf16.msrb.mxu0 %v2059_v52  ;;  %v2086_v52 = vld [vmem:[%s2714_s1 + $0x200] sm:$0xff] }
  0x2b   :  { %1194 = vmatpush.bf16.msrb.mxu2 %v2075_v53  ;;  %v2102_v53 = vld [vmem:[%s2714_s1 + $0x280] sm:$0xff] }
  0x2c   :  { %1208 = vmatpush.bf16.msrb.mxu3 %v2083_v54  ;;  %v2110_v54 = vld [vmem:[%s2714_s1 + $0x2c0] sm:$0xff] }
  0x2d   :  { %1180 = vmatpush.bf16.msrb.mxu1 %v2067_v55  ;;  %v2125_v55 = vld [vmem:[%s2714_s1 + $0x338] sm:$0xff] }
  0x2e   :  { %1167 = vmatpush.bf16.msrb.mxu0 %v2058_v56  ;;  %v2141_v56 = vld [vmem:[%s2714_s1 + $0x3b8] sm:$0xff] }
  0x2f   :  { %1195 = vmatpush.bf16.msrb.mxu2 %v2074_v57  ;;  %v28_v57 = vld [vmem:[%s2713_s0 + $0x40] sm:$0xff] }
  0x30   :  { %1209 = vmatpush.bf16.msrb.mxu3 %v2082_v58  ;;  %v45_v58 = vld [vmem:[%s2713_s0 + $0xc8] sm:$0xff] }
  0x31   :  { %1181 = vmatpush.bf16.msrb.mxu1 %v2066_v59  ;;  %v30_v59 = vld [vmem:[%s2713_s0 + $0x50] sm:$0xff] }
  0x32   :  { %1168 = vmatpush.bf16.msrb.mxu0 %v2057_v60  ;;  %v47_v60 = vld [vmem:[%s2713_s0 + $0xd8] sm:$0xff] }
  0x33   :  { %1196 = vmatpush.bf16.msrb.mxu2 %v2073_v61  ;;  %v2149_v61 = vld [vmem:[%s2714_s1 + $0x3f8] sm:$0xff] }
  0x34   :  { %1210 = vmatpush.bf16.msrb.mxu3 %v2081_v62  ;;  %v31_v62 = vld [vmem:[%s2713_s0 + $0x58] sm:$0xff] }
  0x35   :  { %1182 = vmatpush.bf16.msrb.mxu1 %v2065_v63  ;;  %v48_v63 = vld [vmem:[%s2713_s0 + $0xe0] sm:$0xff] }
  0x36   :  { %1169 = vmatpush.bf16.msrb.mxu0 %v2056_v0  ;;  %v2094_v0 = vld [vmem:[%s2714_s1 + $0x240] sm:$0xff] }
  0x37   :  { %1197 = vmatpush.bf16.msrb.mxu2 %v2072_v1  ;;  %v29_v1 = vld [vmem:[%s2713_s0 + $0x48] sm:$0xff] }
  0x38   :  { %1211 = vmatpush.bf16.msrb.mxu3 %v2080_v2  ;;  %v46_v2 = vld [vmem:[%s2713_s0 + $0xd0] sm:$0xff] }
  0x39   :  { %1183 = vmatpush.bf16.msrb.mxu1 %v2064_v3  ;;  %v62_v3 = vpack.c.bf16 %v45_v58, %v28_v57 }
  0x3a   :  { %1170 = vmatpush.bf16.msrb.mxu0 %v2055_v4  ;;  %v64_v4 = vpack.c.bf16 %v47_v60, %v30_v59  ;;  %v2164_v60 = vld [vmem:[%s2716_s3] ss:$0 sm:$0xff] }
  0x3b   :  { %1198 = vmatpush.bf16.msrb.mxu2 %v2071_v5  ;;  %v2133_v5 = vld [vmem:[%s2714_s1 + $0x378] sm:$0xff] }
  0x3c   :  { %1212 = vmatpush.bf16.msrb.mxu3 %v2079_v6  ;;  %v65_v6 = vpack.c.bf16 %v48_v63, %v31_v62  ;;  %v2158_v62 = vld [vmem:[%s2715_s2 + $0x38] sm:$0xff] }
  0x3d   :  { %1184 = vmatpush.bf16.msrb.mxu1 %v2063_v7  ;;  %v63_v7 = vpack.c.bf16 %v46_v2, %v29_v1  ;;  %v2157_v2 = vld [vmem:[%s2715_s2 + $0x30] sm:$0xff] }
  0x3e   :  { %1171 = vmatpush.bf16.msrb.mxu0 %v2054_v8  ;;  %v2124_v8 = vld [vmem:[%s2714_s1 + $0x330] sm:$0xff] }
  0x3f   :  { %1199 = vmatpush.bf16.msrb.mxu2 %v2070_v9  ;;  %v2140_v9 = vld [vmem:[%s2714_s1 + $0x3b0] sm:$0xff] }
  0x40   :  { %1213 = vmatpush.bf16.msrb.mxu3 %v2078_v10  ;;  %v2148_v10 = vld [vmem:[%s2714_s1 + $0x3f0] sm:$0xff] }
  0x41   :  { %1185 = vmatpush.bf16.msrb.mxu1 %v2062_v20  ;;  %1172 = vmatmul.bf16.vlgmr.msrb.gmra.mxu0 %v58_v23  ;;  %v2121_v20 = vld [vmem:[%s2714_s1 + $0x318] sm:$0xff] }
  0x42   :  { %1220 = vmatpush.bf16.msra.mxu0 %v2093_v11  ;;  %1200 = vmatmul.bf16.vlgmr.msrb.gmra.mxu2 %v60_v24  ;;  %v2132_v11 = vld [vmem:[%s2714_s1 + $0x370] sm:$0xff]  ;;  %v2129_v23 = vld [vmem:[%s2714_s1 + $0x358] sm:$0xff] }
  0x43   :  { %1248 = vmatpush.bf16.msra.mxu2 %v2109_v12  ;;  %1214 = vmatmul.bf16.vlgmr.msrb.gmra.mxu3 %v61_v26  ;;  %v2123_v12 = vld [vmem:[%s2714_s1 + $0x328] sm:$0xff]  ;;  %v2120_v24 = vld [vmem:[%s2714_s1 + $0x310] sm:$0xff] }
  0x44   :  { %1262 = vmatpush.bf16.msra.mxu3 %v2117_v17  ;;  %1186 = vmatmul.bf16.vlgmr.msrb.gmra.mxu1 %v59_v27  ;;  %v2138_v17 = vld [vmem:[%s2714_s1 + $0x3a0] sm:$0xff]  ;;  %v2144_v26 = vld [vmem:[%s2714_s1 + $0x3d0] sm:$0xff] }
  0x45   :  { %1234 = vmatpush.bf16.msra.mxu1 %v2101_v25  ;;  %v2136_v25 = vld [vmem:[%s2714_s1 + $0x390] sm:$0xff] }
  0x46   :  { %1221 = vmatpush.bf16.msra.mxu0 %v2092_v28  ;;  %v2128_v27 = vld [vmem:[%s2714_s1 + $0x350] sm:$0xff]  ;;  %v2119_v28 = vld [vmem:[%s2714_s1 + $0x308] sm:$0xff] }
  0x47   :  { %1249 = vmatpush.bf16.msra.mxu2 %v2108_v29  ;;  %v2135_v29 = vld [vmem:[%s2714_s1 + $0x388] sm:$0xff] }
  0x48   :  { %1263 = vmatpush.bf16.msra.mxu3 %v2116_v30  ;;  %v2143_v30 = vld [vmem:[%s2714_s1 + $0x3c8] sm:$0xff] }
  0x49   :  { %1235 = vmatpush.bf16.msra.mxu1 %v2100_v31  ;;  %v2127_v31 = vld [vmem:[%s2714_s1 + $0x348] sm:$0xff] }
  0x4a   :  { %1222 = vmatpush.bf16.msra.mxu0 %v2091_v32  ;;  %v2118_v32 = vld [vmem:[%s2714_s1 + $0x300] sm:$0xff] }
  0x4b   :  { %1250 = vmatpush.bf16.msra.mxu2 %v2107_v33  ;;  %v2134_v33 = vld [vmem:[%s2714_s1 + $0x380] sm:$0xff] }
  0x4c   :  { %1264 = vmatpush.bf16.msra.mxu3 %v2115_v34  ;;  %v2142_v34 = vld [vmem:[%s2714_s1 + $0x3c0] sm:$0xff] }
  0x4d   :  { %1236 = vmatpush.bf16.msra.mxu1 %v2099_v35  ;;  %v32_v35 = vld [vmem:[%s2713_s0 + $0x60] sm:$0xff] }
  0x4e   :  { %1223 = vmatpush.bf16.msra.mxu0 %v2090_v36  ;;  %v49_v36 = vld [vmem:[%s2713_s0 + $0xe8] sm:$0xff] }
  0x4f   :  { %1251 = vmatpush.bf16.msra.mxu2 %v2106_v37  ;;  %v34_v37 = vld [vmem:[%s2713_s0 + $0x70] sm:$0xff] }
  0x50   :  { %1265 = vmatpush.bf16.msra.mxu3 %v2114_v38  ;;  %v51_v38 = vld [vmem:[%s2713_s0 + $0xf8] sm:$0xff] }
  0x51   :  { %1237 = vmatpush.bf16.msra.mxu1 %v2098_v39  ;;  %v35_v39 = vld [vmem:[%s2713_s0 + $0x78] sm:$0xff] }
  0x52   :  { %1224 = vmatpush.bf16.msra.mxu0 %v2089_v40  ;;  %v52_v40 = vld [vmem:[%s2713_s0 + $0x100] sm:$0xff] }
  0x53   :  { %1252 = vmatpush.bf16.msra.mxu2 %v2105_v41  ;;  %v2150_v41 = vld [vmem:[%s2714_s1 + $0x400] sm:$0xff] }
  0x54   :  { %1266 = vmatpush.bf16.msra.mxu3 %v2113_v42  ;;  %v2126_v42 = vld [vmem:[%s2714_s1 + $0x340] sm:$0xff] }
  0x55   :  { %1238 = vmatpush.bf16.msra.mxu1 %v2097_v43  ;;  %v66_v43 = vpack.c.bf16 %v49_v36, %v32_v35 }
  0x56   :  { %1225 = vmatpush.bf16.msra.mxu0 %v2088_v44  ;;  %v33_v44 = vld [vmem:[%s2713_s0 + $0x68] sm:$0xff] }
  0x57   :  { %1253 = vmatpush.bf16.msra.mxu2 %v2104_v45  ;;  %v50_v45 = vld [vmem:[%s2713_s0 + $0xf0] sm:$0xff] }
  0x58   :  { %1267 = vmatpush.bf16.msra.mxu3 %v2112_v46  ;;  %v68_v46 = vpack.c.bf16 %v51_v38, %v34_v37 }
  0x59   :  { %1239 = vmatpush.bf16.msra.mxu1 %v2096_v47  ;;  %v69_v47 = vpack.c.bf16 %v52_v40, %v35_v39 }
  0x5a   :  { %1226 = vmatpush.bf16.msra.mxu0 %v2087_v48  ;;  %v67_v48 = vpack.c.bf16 %v50_v45, %v33_v44 }
  0x5b   :  { %1254 = vmatpush.bf16.msra.mxu2 %v2103_v49  ;;  %v36_v49 = vld [vmem:[%s2713_s0 + $0x80] sm:$0xff] }
  0x5c   :  { %1268 = vmatpush.bf16.msra.mxu3 %v2111_v50  ;;  %v53_v50 = vld [vmem:[%s2713_s0 + $0x108] sm:$0xff] }
  0x5d   :  { %1240 = vmatpush.bf16.msra.mxu1 %v2095_v51  ;;  %v70_v51 = vpack.c.bf16 %v53_v50, %v36_v49 }
  0x5e   :  { %1227 = vmatpush.bf16.msra.mxu0 %v2086_v52 }
  0x5f   :  { %1255 = vmatpush.bf16.msra.mxu2 %v2102_v53 }
  0x60   :  { %1269 = vmatpush.bf16.msra.mxu3 %v2110_v54 }
  0x61   :  { %1241 = vmatpush.bf16.msra.mxu1 %v2094_v0  ;;  %1228 = vmatmul.bf16.vlgmr.msra.gmra.mxu0 %v62_v3 }
  0x62   :  { %1276 = vmatpush.bf16.msrb.mxu0 %v2125_v55  ;;  %1256 = vmatmul.bf16.vlgmr.msra.gmra.mxu2 %v64_v4 }
  0x63   :  { %1304 = vmatpush.bf16.msrb.mxu2 %v2141_v56  ;;  %1270 = vmatmul.bf16.vlgmr.msra.gmra.mxu3 %v65_v6  ;;  %v2156_v6 = vld [vmem:[%s2715_s2 + $0x28] sm:$0xff] }
  0x64   :  { %1318 = vmatpush.bf16.msrb.mxu3 %v2149_v61  ;;  %1242 = vmatmul.bf16.vlgmr.msra.gmra.mxu1 %v63_v7 }
  0x65   :  { %1290 = vmatpush.bf16.msrb.mxu1 %v2133_v5 }
  0x66   :  { %1277 = vmatpush.bf16.msrb.mxu0 %v2124_v8 }
  0x67   :  { %1305 = vmatpush.bf16.msrb.mxu2 %v2140_v9 }
  0x68   :  { %1319 = vmatpush.bf16.msrb.mxu3 %v2148_v10 }
  0x69   :  { %1291 = vmatpush.bf16.msrb.mxu1 %v2132_v11  ;;  %v2155_v11 = vld [vmem:[%s2715_s2 + $0x20] sm:$0xff] }
  0x6a   :  { %1278 = vmatpush.bf16.msrb.mxu0 %v2123_v12 }
  0x6b   :  { %1306 = vmatpush.bf16.msrb.mxu2 %v2139_v13 }
  0x6c   :  { %1320 = vmatpush.bf16.msrb.mxu3 %v2147_v14 }
  0x6d   :  { %1292 = vmatpush.bf16.msrb.mxu1 %v2131_v15 }
  0x6e   :  { %1279 = vmatpush.bf16.msrb.mxu0 %v2122_v16  ;;  %v2154_v16 = vld [vmem:[%s2715_s2 + $0x18] sm:$0xff] }
  0x6f   :  { %1307 = vmatpush.bf16.msrb.mxu2 %v2138_v17 }
  0x70   :  { %1321 = vmatpush.bf16.msrb.mxu3 %v2146_v18 }
  0x71   :  { %1293 = vmatpush.bf16.msrb.mxu1 %v2130_v19 }
  0x72   :  { %1280 = vmatpush.bf16.msrb.mxu0 %v2121_v20 }
  0x73   :  { %1308 = vmatpush.bf16.msrb.mxu2 %v2137_v21  ;;  %v2153_v21 = vld [vmem:[%s2715_s2 + $0x10] sm:$0xff] }
  0x74   :  { %1322 = vmatpush.bf16.msrb.mxu3 %v2145_v22 }
  0x75   :  { %1294 = vmatpush.bf16.msrb.mxu1 %v2129_v23 }
  0x76   :  { %1281 = vmatpush.bf16.msrb.mxu0 %v2120_v24 }
  0x77   :  { %1309 = vmatpush.bf16.msrb.mxu2 %v2136_v25  ;;  %v2152_v25 = vld [vmem:[%s2715_s2 + $0x8] sm:$0xff] }
  0x78   :  { %1323 = vmatpush.bf16.msrb.mxu3 %v2144_v26 }
  0x79   :  { %1295 = vmatpush.bf16.msrb.mxu1 %v2128_v27 }
  0x7a   :  { %1282 = vmatpush.bf16.msrb.mxu0 %v2119_v28 }
  0x7b   :  { %1310 = vmatpush.bf16.msrb.mxu2 %v2135_v29 }
  0x7c   :  { %1324 = vmatpush.bf16.msrb.mxu3 %v2143_v30 }
  0x7d   :  { %1296 = vmatpush.bf16.msrb.mxu1 %v2127_v31  ;;  %v2151_v31 = vld [vmem:[%s2715_s2] sm:$0xff] }
  0x7e   :  { %1283 = vmatpush.bf16.msrb.mxu0 %v2118_v32 }
  0x7f   :  { %1311 = vmatpush.bf16.msrb.mxu2 %v2134_v33 }
  0x80   :  { %1325 = vmatpush.bf16.msrb.mxu3 %v2142_v34 }
  0x81   :  { %1297 = vmatpush.bf16.msrb.mxu1 %v2126_v42  ;;  %1284 = vmatmul.bf16.vlgmr.msrb.gmra.mxu0 %v66_v43 }
  0x82   :  { %1339 = vmatpush.bf16.msra.mxu0 %v2150_v41  ;;  %1312 = vmatmul.bf16.vlgmr.msrb.gmra.mxu2 %v68_v46 }
  0x83   :  { %1326 = vmatmul.bf16.vlgmr.msrb.gmra.mxu3 %v69_v47 }
  0x84   :  { %1298 = vmatmul.bf16.vlgmr.msrb.gmra.mxu1 %v67_v48 }
  0x85   :  { %1414 = vmatpush.bf16.msra.mxu1 %v2158_v62 }
  0x89   :  { %1415 = vmatpush.bf16.msra.mxu1 %v2157_v2 }
  0x8d   :  { %1416 = vmatpush.bf16.msra.mxu1 %v2156_v6 }
  0x91   :  { %1989 = vmatmul.msk.bf16.vlgmr.msra.gmra.mxu0 %vm1104_vm0, %v70_v51  ;;  %1417 = vmatpush.bf16.msra.mxu1 %v2155_v11 }
  0x95   :  { %1418 = vmatpush.bf16.msra.mxu1 %v2154_v16 }
  0x99   :  { %1419 = vmatpush.bf16.msra.mxu1 %v2153_v21 }
  0x9d   :  { %1420 = vmatpush.bf16.msra.mxu1 %v2152_v25 }
  0x9e   :  { %v1117_v52 = vpop.f32.mrf.mxu0 }
  0x9f   :  { %v1118_v0 = vadd.f32 %v2164_v60, %v1117_v52 }
  0xa1   :  { %v1131_v53 = vpop.f32.mrf.mxu1  ;;  %1421 = vmatpush.bf16.msra.mxu1 %v2151_v31 }
  0xa2   :  { %v1132_v3 = vadd.f32 %v1131_v53, %v1118_v0 }
  0xa5   :  { %v1145_v54 = vpop.f32.mrf.mxu2 }
  0xa6   :  { %v1119_v55 = vpop.f32.mrf.mxu0  ;;  %v1159_v56 = vpop.f32.mrf.mxu3  ;;  %v1146_v8 = vadd.f32 %v1145_v54, %v1132_v3 }
  0xa7   :  { %v1120_v5 = vadd.f32 %v2164_v60, %v1119_v55 }
  0xa8   :  { %v1160_v12 = vadd.f32 %v1159_v56, %v1146_v8 }
  0xa9   :  { %v1133_v57 = vpop.f32.mrf.mxu1 }
  0xaa   :  { %v1134_v10 = vadd.f32 %v1133_v57, %v1120_v5  ;;  %v2165_v5 = vld [vmem:[%s2716_s3 + $0x1] ss:$0 sm:$0xff] }
  0xad   :  { %v1147_v58 = vpop.f32.mrf.mxu2 }
  0xae   :  { %v1161_v61 = vpop.f32.mrf.mxu3  ;;  %v1148_v15 = vadd.f32 %v1147_v58, %v1134_v10 }
  0xb0   :  { %v1162_v20 = vadd.f32 %v1161_v61, %v1148_v15 }
  0xbe   :  { %v1173_v59 = vpop.f32.mrf.mxu0 }
  0xbf   :  { %v1174_v17 = vadd.f32 %v1173_v59, %v1160_v12 }
  0xc1   :  { %v1187_v63 = vpop.f32.mrf.mxu1 }
  0xc2   :  { %v1188_v22 = vadd.f32 %v1187_v63, %v1174_v17 }
  0xc5   :  { %v1201_v1 = vpop.f32.mrf.mxu2 }
  0xc6   :  { %v1175_v4 = vpop.f32.mrf.mxu0  ;;  %v1215_v7 = vpop.f32.mrf.mxu3  ;;  %v1202_v27 = vadd.f32 %v1201_v1, %v1188_v22 }
  0xc7   :  { %v1176_v23 = vadd.f32 %v1175_v4, %v1162_v20 }
  0xc8   :  { %v1216_v33 = vadd.f32 %v1215_v7, %v1202_v27 }
  0xc9   :  { %v1189_v9 = vpop.f32.mrf.mxu1 }
  0xca   :  { %v1190_v28 = vadd.f32 %v1189_v9, %v1176_v23 }
  0xcd   :  { %v1203_v13 = vpop.f32.mrf.mxu2 }
  0xce   :  { %v1217_v18 = vpop.f32.mrf.mxu3  ;;  %v1204_v30 = vadd.f32 %v1203_v13, %v1190_v28 }
  0xd0   :  { %v1218_v34 = vadd.f32 %v1217_v18, %v1204_v30 }
  0xde   :  { %v1229_v14 = vpop.f32.mrf.mxu0 }
  0xdf   :  { %v1230_v35 = vadd.f32 %v1229_v14, %v1216_v33 }
  0xe1   :  { %v1243_v19 = vpop.f32.mrf.mxu1 }
  0xe2   :  { %v1244_v39 = vadd.f32 %v1243_v19, %v1230_v35 }
  0xe5   :  { %v1257_v24 = vpop.f32.mrf.mxu2 }
  0xe6   :  { %v1231_v26 = vpop.f32.mrf.mxu0  ;;  %v1271_v29 = vpop.f32.mrf.mxu3  ;;  %v1258_v42 = vadd.f32 %v1257_v24, %v1244_v39 }
  0xe7   :  { %v1232_v38 = vadd.f32 %v1231_v26, %v1218_v34 }
  0xe8   :  { %v1272_v47 = vadd.f32 %v1271_v29, %v1258_v42 }
  0xe9   :  { %v1245_v32 = vpop.f32.mrf.mxu1 }
  0xea   :  { %v1246_v43 = vadd.f32 %v1245_v32, %v1232_v38 }
  0xed   :  { %v1259_v36 = vpop.f32.mrf.mxu2 }
  0xee   :  { %v1273_v40 = vpop.f32.mrf.mxu3  ;;  %v1260_v44 = vadd.f32 %v1259_v36, %v1246_v43 }
  0xf0   :  { %v1274_v48 = vadd.f32 %v1273_v40, %v1260_v44 }
  0xfe   :  { %v1285_v37 = vpop.f32.mrf.mxu0 }
  0xff   :  { %v1286_v49 = vadd.f32 %v1285_v37, %v1272_v47 }
 0x101   :  { %v1299_v41 = vpop.f32.mrf.mxu1 }
 0x102   :  { %v1300_v53 = vadd.f32 %v1299_v41, %v1286_v49 }
 0x105   :  { %v1313_v45 = vpop.f32.mrf.mxu2 }
 0x106   :  { %v1287_v46 = vpop.f32.mrf.mxu0  ;;  %v1327_v50 = vpop.f32.mrf.mxu3  ;;  %v1314_v56 = vadd.f32 %v1313_v45, %v1300_v53 }
 0x107   :  { %v1288_v51 = vadd.f32 %v1287_v46, %v1274_v48 }
 0x108   :  { %v1328_v59 = vadd.f32 %v1327_v50, %v1314_v56 }
 0x109   :  { %v1301_v52 = vpop.f32.mrf.mxu1 }
 0x10a   :  { %v1302_v57 = vadd.f32 %v1301_v52, %v1288_v51 }
 0x10d   :  { %v1315_v54 = vpop.f32.mrf.mxu2 }
 0x10e   :  { %v1341_v55 = vpop.f32.mrf.mxu0  ;;  %v1316_v58 = vadd.f32 %v1315_v54, %v1302_v57  ;;  %v1329_v60 = vpop.f32.mrf.mxu3 }
 0x10f   :  { %v1342_v62 = vadd.f32 %v1341_v55, %v1328_v59 }
 0x110   :  { %v1330_v61 = vadd.f32 %v1329_v60, %v1316_v58 }
 0x111   :  { %v1346_v1 = vmax.f32 %v1342_v62, 0.0 }
 0x116   :  { %v1343_v63 = vpop.f32.mrf.mxu0 }
 0x117   :  { %v1344_v0 = vadd.f32 %v1343_v63, %v1330_v61 }
 0x119   :  { %v1347_v2 = vmax.f32 %v1344_v0, 0.0 }
 0x11b   :  { %v1348_v3 = vpack.c.bf16 %v1347_v2, %v1346_v1 }
 0x11d   :  { %1422 = vmatmul.bf16.vlgmr.msra.gmra.mxu1 %v1348_v3 }
 0x19a   :  { %v1423_v4 = vpop.f32.mrf.mxu1 }
 0x19b   :  { %v1424_v7 = vadd.f32 %v2165_v5, %v1423_v4 }
 0x1a2   :  { %v1425_v6 = vpop.f32.mrf.mxu1 }
 0x1a3   :  { %v1426_v8 = vadd.f32 %v2165_v5, %v1425_v6 }
 0x1a5   :  { %v2162_v9 = vpack.c.bf16 %v1426_v8, %v1424_v7 }
 0x1a7   :  { %2163 = vst [vmem:[#allocation2] sm:$0xff] %v2162_v9  }
 0x1ae   :  { %v1450_v10 = vld [vmem:[#allocation2] sm:$0xf] }
 0x1af   :  { %1451 = vst [vmem:[%s2717_s4] sm:$0xf] %v1450_v10 }

</bundles_post_ra>
